<compile_context>
chip_gen: v6e
topology: v6e:2x2x1
jax: 0.10.0
libtpu: 0.0.40
codegen_flags: <defaults>
</compile_context>

<pallas_src>
import functools

import jax
import jax.numpy as jnp
from jax.experimental import pallas as pl
from jax.experimental.pallas import tpu as pltpu


def _ac_partials_kernel(inp_ref, tgt_ref, out_ref, *, with_logits, h, w):
    # (TN, H, W) block; cast to f32 in-kernel (inputs arrive in native dtype).
    p = inp_ref[...].astype(jnp.float32)
    t = tgt_ref[...].astype(jnp.float32)
    if with_logits:
        # sigmoid(x) == 0.5 * (tanh(x / 2) + 1): single EUP transcendental.
        p = 0.5 * (jnp.tanh(0.5 * p) + 1.0)

    # Length (contour) term. Matches the PyTorch indexing exactly:
    #   x = p[1:, :] - p[:-1, :];  delta_x = x[1:, :-2] ** 2
    #   y = p[:, 1:] - p[:, :-1];  delta_y = y[:-2, 1:] ** 2
    dx = p[:, 2:, : w - 2] - p[:, 1 : h - 1, : w - 2]     # (TN, H-2, W-2)
    dy = p[:, : h - 2, 2:] - p[:, : h - 2, 1 : w - 1]     # (TN, H-2, W-2)
    length_sum = jnp.sum(jnp.sqrt(dx * dx + dy * dy + 1e-8))

    # Region terms with C_1 = 1, C_2 = 0.
    one_minus_t = 1.0 - t
    rin_sum = jnp.sum(p * one_minus_t * one_minus_t)
    rout_sum = jnp.sum((1.0 - p) * t * t)

    # Lane-dense per-block partials: sublane 0, lanes 0/1/2 hold the sums.
    lane = jax.lax.broadcasted_iota(jnp.int32, (8, 128), 1)
    row = jax.lax.broadcasted_iota(jnp.int32, (8, 128), 0)
    first = row == 0
    tile = (jnp.where(first & (lane == 0), length_sum, 0.0)
            + jnp.where(first & (lane == 1), rin_sum, 0.0)
            + jnp.where(first & (lane == 2), rout_sum, 0.0))
    out_ref[0] = tile


def active_contour_loss(inputs, targets, weight=1.0, with_logits=True):
    """Pallas-TPU implementation of ActiveContourLoss.forward (NCHW inputs)."""
    B, C, H, W = inputs.shape
    N = B * C
    inp = inputs.reshape(N, H, W)     # native dtype; cast happens in-kernel
    tgt = targets.reshape(N, H, W)

    # Pick TN = largest divisor of N whose padded-VMEM f32 block is ~<= 1 MiB.
    # (Padded footprint: sublanes round to 8, lanes round to 128.)
    h_pad = ((H + 7) // 8) * 8
    w_pad = ((W + 127) // 128) * 128
    padded_plane = h_pad * w_pad
    target_elems = 256 * 1024                       # ~1 MiB of f32
    cap = max(1, min(N, target_elems // max(padded_plane, 1)))
    tn = 1
    for d in range(cap, 0, -1):
        if N % d == 0:
            tn = d
            break
    grid = N // tn

    kern = functools.partial(
        _ac_partials_kernel, with_logits=bool(with_logits), h=H, w=W)

    partials = pl.pallas_call(
        kern,
        out_shape=jax.ShapeDtypeStruct((grid, 8, 128), jnp.float32),
        grid_spec=pltpu.PrefetchScalarGridSpec(
            num_scalar_prefetch=0,
            grid=(grid,),
            in_specs=[
                pl.BlockSpec((tn, H, W), lambda g: (g, 0, 0)),
                pl.BlockSpec((tn, H, W), lambda g: (g, 0, 0)),
            ],
            out_specs=pl.BlockSpec((1, 8, 128), lambda g: (g, 0, 0)),
        ),
        compiler_params=pltpu.CompilerParams(
            dimension_semantics=("parallel",),
            vmem_limit_bytes=48 * 1024 * 1024,
        ),
    )(inp, tgt)

    # Tiny final combine in plain JAX (keeps the grid axis fully parallel).
    length_sum = jnp.sum(partials[:, 0, 0])
    rin_sum = jnp.sum(partials[:, 0, 1])
    rout_sum = jnp.sum(partials[:, 0, 2])

    n_len = jnp.float32(N * (H - 2) * (W - 2))
    n_full = jnp.float32(N * H * W)
    length = length_sum / n_len
    region = jnp.abs(rin_sum / n_full) + jnp.abs(rout_sum / n_full)
    return length + jnp.float32(weight) * region


def _reference_loss(inputs, targets, weight=1.0, with_logits=True):
    """Pure-JAX reference mirroring the PyTorch forward exactly."""
    p = jax.nn.sigmoid(inputs) if with_logits else inputs
    x = p[:, :, 1:, :] - p[:, :, :-1, :]
    y = p[:, :, :, 1:] - p[:, :, :, :-1]
    delta_x = x[:, :, 1:, :-2] ** 2
    delta_y = y[:, :, :-2, 1:] ** 2
    delta_u = jnp.abs(delta_x + delta_y)
    length = jnp.mean(jnp.sqrt(delta_u + 1e-8))
    region_in = jnp.abs(jnp.mean(p * (1.0 - targets) ** 2))
    region_out = jnp.abs(jnp.mean((1.0 - p) * targets ** 2))
    return length + weight * (region_in + region_out)


if __name__ == "__main__":
    key = jax.random.PRNGKey(0)
    k1, k2 = jax.random.split(key)
    B, C, H, W = 2, 4, 16, 16
    inputs = jax.random.normal(k1, (B, C, H, W), dtype=jnp.float32)   # logits
    targets = (jax.random.uniform(k2, (B, C, H, W)) > 0.5).astype(jnp.float32)

    loss = active_contour_loss(inputs, targets, weight=1.0, with_logits=True)
    loss = jax.block_until_ready(loss)

    ref = _reference_loss(inputs, targets, weight=1.0, with_logits=True)
    assert jnp.allclose(loss, ref, atol=1e-5, rtol=1e-5), (loss, ref)

    print("KERNEL_OK")
</pallas_src>

<mosaic_0001>
module attributes {stable_mosaic.version = 11 : i64} {
  func.func @_ac_partials_kernel(%arg0: i32, %arg1: memref<8x16x16xf32, #tpu.memory_space<vmem>>, %arg2: memref<8x16x16xf32, #tpu.memory_space<vmem>>, %arg3: memref<1x8x128xf32, #tpu.memory_space<vmem>>) attributes {dimension_semantics = [#tpu.dimension_semantics<parallel>], iteration_bounds = array<i64: 1>, scalar_prefetch = 0 : i64, scratch_operands = 0 : i64, tpu.core_type = #tpu.core_type<tc>, window_params = [{transform_indices = @transform_0, window_bounds = array<i64: 8, 16, 16>}, {transform_indices = @transform_1, window_bounds = array<i64: 8, 16, 16>}, {transform_indices = @transform_2, window_bounds = array<i64: 1, 8, 128>}]} {
    %c0 = arith.constant 0 : index
    %c0_0 = arith.constant 0 : index
    %c0_1 = arith.constant 0 : index
    %0 = vector.load %arg1[%c0, %c0_0, %c0_1] : memref<8x16x16xf32, #tpu.memory_space<vmem>>, vector<8x16x16xf32>
    %c0_2 = arith.constant 0 : index
    %c0_3 = arith.constant 0 : index
    %c0_4 = arith.constant 0 : index
    %1 = vector.load %arg2[%c0_2, %c0_3, %c0_4] : memref<8x16x16xf32, #tpu.memory_space<vmem>>, vector<8x16x16xf32>
    %cst = arith.constant 5.000000e-01 : f32
    %2 = vector.broadcast %cst : f32 to vector<8x16x16xf32>
    %3 = arith.mulf %2, %0 : vector<8x16x16xf32>
    %4 = math.tanh %3 : vector<8x16x16xf32>
    %cst_5 = arith.constant 1.000000e+00 : f32
    %5 = vector.broadcast %cst_5 : f32 to vector<8x16x16xf32>
    %6 = arith.addf %4, %5 : vector<8x16x16xf32>
    %cst_6 = arith.constant 5.000000e-01 : f32
    %7 = vector.broadcast %cst_6 : f32 to vector<8x16x16xf32>
    %8 = arith.mulf %7, %6 : vector<8x16x16xf32>
    %9 = vector.extract_strided_slice %8 {offsets = [0, 2, 0], sizes = [8, 14, 14], strides = [1, 1, 1]} : vector<8x16x16xf32> to vector<8x14x14xf32>
    %10 = vector.extract_strided_slice %8 {offsets = [0, 1, 0], sizes = [8, 14, 14], strides = [1, 1, 1]} : vector<8x16x16xf32> to vector<8x14x14xf32>
    %11 = arith.subf %9, %10 : vector<8x14x14xf32>
    %12 = vector.extract_strided_slice %8 {offsets = [0, 0, 2], sizes = [8, 14, 14], strides = [1, 1, 1]} : vector<8x16x16xf32> to vector<8x14x14xf32>
    %13 = vector.extract_strided_slice %8 {offsets = [0, 0, 1], sizes = [8, 14, 14], strides = [1, 1, 1]} : vector<8x16x16xf32> to vector<8x14x14xf32>
    %14 = arith.subf %12, %13 : vector<8x14x14xf32>
    %15 = arith.mulf %11, %11 : vector<8x14x14xf32>
    %16 = arith.mulf %14, %14 : vector<8x14x14xf32>
    %17 = arith.addf %15, %16 : vector<8x14x14xf32>
    %cst_7 = arith.constant 9.99999993E-9 : f32
    %18 = vector.broadcast %cst_7 : f32 to vector<8x14x14xf32>
    %19 = arith.addf %17, %18 : vector<8x14x14xf32>
    %20 = math.sqrt %19 : vector<8x14x14xf32>
    %21 = vector.shape_cast %20 : vector<8x14x14xf32> to vector<1x8x14x14xf32>
    %cst_8 = arith.constant dense<0.000000e+00> : vector<1xf32>
    %22 = vector.multi_reduction <add>, %21, %cst_8 [1, 2, 3] : vector<1x8x14x14xf32> to vector<1xf32>
    %23 = vector.shape_cast %22 : vector<1xf32> to vector<1x1x1x1xf32>
    %24 = vector.extract %23[0, 0, 0, 0] : f32 from vector<1x1x1x1xf32>
    %cst_9 = arith.constant 1.000000e+00 : f32
    %25 = vector.broadcast %cst_9 : f32 to vector<8x16x16xf32>
    %26 = arith.subf %25, %1 : vector<8x16x16xf32>
    %27 = arith.mulf %8, %26 : vector<8x16x16xf32>
    %28 = arith.mulf %27, %26 : vector<8x16x16xf32>
    %29 = vector.shape_cast %28 : vector<8x16x16xf32> to vector<1x8x16x16xf32>
    %cst_10 = arith.constant dense<0.000000e+00> : vector<1xf32>
    %30 = vector.multi_reduction <add>, %29, %cst_10 [1, 2, 3] : vector<1x8x16x16xf32> to vector<1xf32>
    %31 = vector.shape_cast %30 : vector<1xf32> to vector<1x1x1x1xf32>
    %32 = vector.extract %31[0, 0, 0, 0] : f32 from vector<1x1x1x1xf32>
    %cst_11 = arith.constant 1.000000e+00 : f32
    %33 = vector.broadcast %cst_11 : f32 to vector<8x16x16xf32>
    %34 = arith.subf %33, %8 : vector<8x16x16xf32>
    %35 = arith.mulf %34, %1 : vector<8x16x16xf32>
    %36 = arith.mulf %35, %1 : vector<8x16x16xf32>
    %37 = vector.shape_cast %36 : vector<8x16x16xf32> to vector<1x8x16x16xf32>
    %cst_12 = arith.constant dense<0.000000e+00> : vector<1xf32>
    %38 = vector.multi_reduction <add>, %37, %cst_12 [1, 2, 3] : vector<1x8x16x16xf32> to vector<1xf32>
    %39 = vector.shape_cast %38 : vector<1xf32> to vector<1x1x1x1xf32>
    %40 = vector.extract %39[0, 0, 0, 0] : f32 from vector<1x1x1x1xf32>
    %41 = tpu.iota {dimensions = array<i32: 1>} : vector<8x128xi32>
    %42 = tpu.iota {dimensions = array<i32: 0>} : vector<8x128xi32>
    %c0_i32 = arith.constant 0 : i32
    %43 = vector.broadcast %c0_i32 : i32 to vector<8x128xi32>
    %44 = arith.cmpi eq, %42, %43 : vector<8x128xi32>
    %c0_i32_13 = arith.constant 0 : i32
    %45 = vector.broadcast %c0_i32_13 : i32 to vector<8x128xi32>
    %46 = arith.cmpi eq, %41, %45 : vector<8x128xi32>
    %47 = arith.andi %44, %46 : vector<8x128xi1>
    %cst_14 = arith.constant 0.000000e+00 : f32
    %48 = vector.broadcast %24 : f32 to vector<8x128xf32>
    %49 = vector.broadcast %cst_14 : f32 to vector<8x128xf32>
    %50 = arith.select %47, %48, %49 : vector<8x128xi1>, vector<8x128xf32>
    %c1_i32 = arith.constant 1 : i32
    %51 = vector.broadcast %c1_i32 : i32 to vector<8x128xi32>
    %52 = arith.cmpi eq, %41, %51 : vector<8x128xi32>
    %53 = arith.andi %44, %52 : vector<8x128xi1>
    %cst_15 = arith.constant 0.000000e+00 : f32
    %54 = vector.broadcast %32 : f32 to vector<8x128xf32>
    %55 = vector.broadcast %cst_15 : f32 to vector<8x128xf32>
    %56 = arith.select %53, %54, %55 : vector<8x128xi1>, vector<8x128xf32>
    %57 = arith.addf %50, %56 : vector<8x128xf32>
    %c2_i32 = arith.constant 2 : i32
    %58 = vector.broadcast %c2_i32 : i32 to vector<8x128xi32>
    %59 = arith.cmpi eq, %41, %58 : vector<8x128xi32>
    %60 = arith.andi %44, %59 : vector<8x128xi1>
    %cst_16 = arith.constant 0.000000e+00 : f32
    %61 = vector.broadcast %40 : f32 to vector<8x128xf32>
    %62 = vector.broadcast %cst_16 : f32 to vector<8x128xf32>
    %63 = arith.select %60, %61, %62 : vector<8x128xi1>, vector<8x128xf32>
    %64 = arith.addf %57, %63 : vector<8x128xf32>
    %c0_17 = arith.constant 0 : index
    %c0_18 = arith.constant 0 : index
    %c0_19 = arith.constant 0 : index
    %65 = vector.load %arg3[%c0_17, %c0_18, %c0_19] : memref<1x8x128xf32, #tpu.memory_space<vmem>>, vector<1x8x128xf32>
    %66 = vector.shape_cast %65 : vector<1x8x128xf32> to vector<8x128xf32>
    %67 = vector.shape_cast %64 : vector<8x128xf32> to vector<1x8x128xf32>
    tpu.vector_store %arg3[%c0_17, %c0_18, %c0_19], %67 {strides = array<i32>} : memref<1x8x128xf32, #tpu.memory_space<vmem>>, vector<1x8x128xf32>,
    return
  }
  func.func @transform_0(%arg0: i32) -> (i32, i32, i32) {
    %c0_i32 = arith.constant 0 : i32
    %c0_i32_0 = arith.constant 0 : i32
    %c0_i32_1 = arith.constant 0 : i32
    return %arg0, %c0_i32, %c0_i32_0 : i32, i32, i32
  }
  func.func @transform_1(%arg0: i32) -> (i32, i32, i32) {
    %c0_i32 = arith.constant 0 : i32
    %c0_i32_0 = arith.constant 0 : i32
    %c0_i32_1 = arith.constant 0 : i32
    return %arg0, %c0_i32, %c0_i32_0 : i32, i32, i32
  }
  func.func @transform_2(%arg0: i32) -> (i32, i32, i32) {
    %c0_i32 = arith.constant 0 : i32
    %c0_i32_0 = arith.constant 0 : i32
    %c0_i32_1 = arith.constant 0 : i32
    return %arg0, %c0_i32, %c0_i32_0 : i32, i32, i32
  }
}

</mosaic_0001>

<bundles_post_ra>
// kernel: tpu_custom_call.1
= control target key start
LH: loop header
LB: loop body
LE: loop exit
PB: predicated region body
PF: predicated region fallthrough
CT: control target
= control target key end

     0   :  { %7 = vsyncpa [#allocation3], 0  ;;  %s1533_s0 = inlined_call_operand.hbm [shape: f32[8,16,16], index: 0, kind: input, shape index: {}]   ;;  %s1534_s1 = inlined_call_operand.hbm [shape: f32[8,16,16], index: 1, kind: input, shape index: {}]   ;;  %s1535_s2 = inlined_call_operand.hbm [shape: f32[1,8,128], index: 2, kind: output, shape index: {}]  }
   0x1   :  { %8 = vsyncpa [#allocation6], 0 }
   0x2   :  { %9 = vsyncpa [#allocation4], 0  ;;  %s993_s9 = smov [#allocation2]  }
   0x3   :  { %s15_s10 = sshll.u32 %s993_s9, 4  ;;  %s16_s10 = int_to_ptr.vmem [resolvable:$true] %s15_s10 }
   0x4   :  { %s935_s11 = scalar_lea.vmem %s16_s10, 2048  ;;  %p940_p1 = scmp.lt.s32.totalorder %s16_s10, %s16_s10 }
   0x5   :  { %p936_p0 = scmp.ne.s32.totalorder %s16_s10, %s935_s11  ;;  %p941_p2 = scmp.lt.s32.totalorder %s935_s11, %s935_s11 }
   0x7   :  { %p942_p3 = por %p941_p2, %p940_p1 }
   0x9   :  { %p943_p4 = pnand %p942_p3, %p936_p0 }
   0xb   :  { %946 = shalt.err (!%p943_p4)
}
   0xc   :  { %s994_s12 = smov 128   ;;  %s995_s13 = smov 8  }
   0xd   :  { %21 = dma.hbm_to_vmem [thread:$0]  %s1533_s0, 2048, %s16_s10, [#allocation3], %s994_s12, %s994_s12, %s995_s13  }
   0xe   :  { %s996_s16 = smov [#allocation5]  }
   0xf   :  { %s27_s17 = sshll.u32 %s996_s16, 4  ;;  %s28_s17 = int_to_ptr.vmem [resolvable:$true] %s27_s17 }
  0x10   :  { %s955_s18 = scalar_lea.vmem %s28_s17, 2048  ;;  %p960_p6 = scmp.lt.s32.totalorder %s28_s17, %s28_s17 }
  0x11   :  { %p956_p5 = scmp.ne.s32.totalorder %s28_s17, %s955_s18  ;;  %p961_p7 = scmp.lt.s32.totalorder %s955_s18, %s955_s18 }
  0x13   :  { %p962_p8 = por %p961_p7, %p960_p6 }
  0x15   :  { %p963_p9 = pnand %p962_p8, %p956_p5 }
  0x17   :  { %966 = shalt.err (!%p963_p9)
}
  0x18   :  { %33 = dma.hbm_to_vmem [thread:$0]  %s1534_s1, 2048, %s28_s17, [#allocation6], %s994_s12, %s994_s12, %s995_s13  }
  0x19   :  { %987 = dma.done.wait [#allocation3], 2048  }
  0x1a   :  { %988 = vsyncadd [#allocation3], 4294965248 }
  0x1b   :  { %989 = dma.done.wait [#allocation6], 2048  }
  0x1c   :  { %990 = vsyncadd [#allocation6], 4294965248  ;;  %v42_v0 = vld [vmem:[#allocation2 + $0x10] sm:$0xff]  ;;  %v40_v1 = vld [vmem:[#allocation2] sm:$0xff]  ;;  %s997_s0 = smov 1   ;;  %s998_s1 = smov 126  }
  0x1d   :  { %v43_v2 = vld [vmem:[#allocation2 + $0x18] sm:$0xff]  ;;  %v74_v3 = vmul.f32 0.5, %v42_v0  ;;  %v72_v4 = vmul.f32 0.5, %v40_v1  ;;  %v41_v6 = vld [vmem:[#allocation2 + $0x8] sm:$0xff]  ;;  %v44_v7 = vld [vmem:[#allocation2 + $0x20] sm:$0xff]  ;;  %vm321_vm0 = vcmask 1041408  }
  0x1e   :  { %v75_v5 = vmul.f32 0.5, %v43_v2  ;;  %v45_v8 = vld [vmem:[#allocation2 + $0x28] sm:$0xff]  ;;  %v73_v9 = vmul.f32 0.5, %v41_v6  ;;  %v46_v10 = vld [vmem:[#allocation2 + $0x30] sm:$0xff]  ;;  %v76_v11 = vmul.f32 0.5, %v44_v7  ;;  %v47_v12 = vld [vmem:[#allocation2 + $0x38] sm:$0xff] }
  0x1f   :  { %863 = vtanh.f32 %v74_v3  ;;  %v77_v13 = vmul.f32 0.5, %v45_v8  ;;  %v78_v14 = vmul.f32 0.5, %v46_v10  ;;  %v79_v15 = vmul.f32 0.5, %v47_v12  ;;  %v49_v16 = vld [vmem:[#allocation2 + $0x48] sm:$0xff]  ;;  %v48_v17 = vld [vmem:[#allocation2 + $0x40] sm:$0xff]  ;;  %v51_v20 = vld [vmem:[#allocation2 + $0x58] sm:$0xff] }
  0x20   :  { %865 = vtanh.f32 %v72_v4  ;;  %v81_v18 = vmul.f32 0.5, %v49_v16  ;;  %v80_v19 = vmul.f32 0.5, %v48_v17  ;;  %v50_v21 = vld [vmem:[#allocation2 + $0x50] sm:$0xff]  ;;  %v83_v22 = vmul.f32 0.5, %v51_v20  ;;  %v53_v24 = vld [vmem:[#allocation2 + $0x68] sm:$0xff]  ;;  %v52_v25 = vld [vmem:[#allocation2 + $0x60] sm:$0xff] }
  0x21   :  { %867 = vtanh.f32 %v75_v5  ;;  %v82_v23 = vmul.f32 0.5, %v50_v21  ;;  %v85_v29 = vmul.f32 0.5, %v53_v24  ;;  %v84_v32 = vmul.f32 0.5, %v52_v25  ;;  %v54_v33 = vld [vmem:[#allocation2 + $0x70] sm:$0xff]  ;;  %v55_v34 = vld [vmem:[#allocation2 + $0x78] sm:$0xff]  ;;  %s999_s24 = smov [#allocation7]  }
  0x22   :  { %869 = vtanh.f32 %v73_v9  ;;  %v86_v43 = vmul.f32 0.5, %v54_v33  ;;  %v87_v44 = vmul.f32 0.5, %v55_v34  ;;  %vm685_vm1 = vcmask 130048   ;;  %s840_s25 = sshll.u32 %s999_s24, 4  ;;  %s841_s25 = int_to_ptr.vmem [resolvable:$true] %s840_s25 }
  0x23   :  { %871 = vtanh.f32 %v76_v11  ;;  %vm152_vm2 = vcmask 1040384   ;;  %s967_s26 = scalar_lea.vmem %s841_s25, 128  ;;  %p972_p11 = scmp.lt.s32.totalorder %s841_s25, %s841_s25 }
  0x24   :  { %873 = vtanh.f32 %v77_v13  ;;  %p968_p10 = scmp.ne.s32.totalorder %s841_s25, %s967_s26  ;;  %p973_p12 = scmp.lt.s32.totalorder %s967_s26, %s967_s26 }
  0x25   :  { %875 = vtanh.f32 %v78_v14 }
  0x26   :  { %877 = vtanh.f32 %v79_v15  ;;  %p974_p13 = por %p973_p12, %p972_p11 }
  0x27   :  { %879 = vtanh.f32 %v81_v18 }
  0x28   :  { %881 = vtanh.f32 %v80_v19  ;;  %p975_p0 = pnand %p974_p13, %p968_p10 }
  0x29   :  { %883 = vtanh.f32 %v83_v22 }
  0x2a   :  { %885 = vtanh.f32 %v82_v23 }
  0x2b   :  { %887 = vtanh.f32 %v85_v29 }
  0x2c   :  { %v864_v26 = vpop.eup %863  ;;  %889 = vtanh.f32 %v84_v32 }
  0x2d   :  { %v866_v27 = vpop.eup %865  ;;  %v106_v28 = vadd.f32 1.0, %v864_v26  ;;  %891 = vtanh.f32 %v87_v44 }
  0x2e   :  { %v868_v30 = vpop.eup %867  ;;  %v104_v31 = vadd.f32 1.0, %v866_v27  ;;  %893 = vtanh.f32 %v86_v43 }
  0x2f   :  { %v870_v35 = vpop.eup %869  ;;  %v1021_v36 = vmul.f32 0.5, %v106_v28  ;;  %v107_v37 = vadd.f32 1.0, %v868_v30 }
  0x30   :  { %v872_v38 = vpop.eup %871  ;;  %v1023_v39 = vmul.f32 0.5, %v104_v31  ;;  %v105_v40 = vadd.f32 1.0, %v870_v35 }
  0x31   :  { %v874_v41 = vpop.eup %873  ;;  %213 = vrot.lane.b32.xlu1 %v1021_v36, %s997_s0  ;;  %v1027_v42 = vmul.f32 0.5, %v107_v37  ;;  %v108_v47 = vadd.f32 1.0, %v872_v38 }
  0x32   :  { %v876_v45 = vpop.eup %875  ;;  %209 = vrot.lane.b32.xlu0 %v1023_v39, %s997_s0  ;;  %v1031_v46 = vmul.f32 0.5, %v105_v40  ;;  %v109_v48 = vadd.f32 1.0, %v874_v41 }
  0x33   :  { %v878_v49 = vpop.eup %877  ;;  %v1039_v53 = vmul.f32 0.5, %v108_v47  ;;  %v110_v54 = vadd.f32 1.0, %v876_v45 }
  0x34   :  { %v1035_v50 = vmul.f32 0.5, %v109_v48  ;;  %v111_v51 = vadd.f32 1.0, %v878_v49  ;;  %v880_v52 = vpop.eup %879 }
  0x35   :  { %215 = vrot.lane.b32.xlu1 %v1027_v42, %s997_s0  ;;  %v882_v55 = vpop.eup %881  ;;  %v113_v57 = vadd.f32 1.0, %v880_v52  ;;  %v1047_v59 = vmul.f32 0.5, %v110_v54 }
  0x36   :  { %211 = vrot.lane.b32.xlu0 %v1031_v46, %s997_s0  ;;  %v1043_v56 = vmul.f32 0.5, %v111_v51  ;;  %v884_v58 = vpop.eup %883  ;;  %v112_v60 = vadd.f32 1.0, %v882_v55 }
  0x37   :  { %v886_v61 = vpop.eup %885  ;;  %v1051_v62 = vmul.f32 0.5, %v113_v57  ;;  %v115_v63 = vadd.f32 1.0, %v884_v58 }
  0x38   :  { %v888_v0 = vpop.eup %887  ;;  %v1055_v1 = vmul.f32 0.5, %v112_v60  ;;  %v114_v2 = vadd.f32 1.0, %v886_v61 }
  0x39   :  { %219 = vrot.lane.b32.xlu1 %v1035_v50, %s997_s0  ;;  %v890_v3 = vpop.eup %889  ;;  %v1059_v4 = vmul.f32 0.5, %v115_v63  ;;  %v117_v5 = vadd.f32 1.0, %v888_v0 }
  0x3a   :  { %217 = vrot.lane.b32.xlu0 %v1039_v53, %s997_s0  ;;  %v892_v6 = vpop.eup %891  ;;  %v1063_v7 = vmul.f32 0.5, %v114_v2  ;;  %v116_v8 = vadd.f32 1.0, %v890_v3 }
  0x3b   :  { %v894_v9 = vpop.eup %893  ;;  %v1067_v10 = vmul.f32 0.5, %v117_v5  ;;  %v119_v11 = vadd.f32 1.0, %v892_v6 }
  0x3c   :  { %v1071_v12 = vmul.f32 0.5, %v116_v8  ;;  %v118_v13 = vadd.f32 1.0, %v894_v9  ;;  %v1106_v8 = vld [vmem:[#allocation5] sm:$0xff] }
  0x3d   :  { %223 = vrot.lane.b32.xlu1 %v1043_v56, %s997_s0  ;;  %v1075_v14 = vmul.f32 0.5, %v119_v11 }
  0x3e   :  { %221 = vrot.lane.b32.xlu0 %v1047_v59, %s997_s0  ;;  %v1079_v15 = vmul.f32 0.5, %v118_v13 }
  0x41   :  { %227 = vrot.lane.b32.xlu1 %v1051_v62, %s997_s0 }
  0x42   :  { %225 = vrot.lane.b32.xlu0 %v1055_v1, %s997_s0 }
  0x45   :  { %231 = vrot.lane.b32.xlu1 %v1059_v4, %s997_s0 }
  0x46   :  { %229 = vrot.lane.b32.xlu0 %v1063_v7, %s997_s0 }
  0x49   :  { %235 = vrot.lane.b32.xlu1 %v1067_v10, %s997_s0 }
  0x4a   :  { %233 = vrot.lane.b32.xlu0 %v1071_v12, %s997_s0 }
  0x4d   :  { %239 = vrot.lane.b32.xlu1 %v1075_v14, %s997_s0 }
  0x4e   :  { %237 = vrot.lane.b32.xlu0 %v1079_v15, %s997_s0 }
  0xa3   :  { %v214_v16 = vpop.permute.xlu1 %213 }
  0xa4   :  { %v259_v17 = vsub.f32 %v1021_v36, %v214_v16  ;;  %v210_v18 = vpop.permute.xlu0 %209 }
  0xa5   :  { %v257_v19 = vsub.f32 %v1023_v39, %v210_v18 }
  0xa6   :  { %v291_v20 = vmul.f32 %v259_v17, %v259_v17  ;;  %v1110_v17 = vld [vmem:[#allocation5 + $0x8] sm:$0xff] }
  0xa7   :  { %v289_v21 = vmul.f32 %v257_v19, %v257_v19  ;;  %v216_v22 = vpop.permute.xlu1 %215  ;;  %v1112_v19 = vld [vmem:[#allocation5 + $0x10] sm:$0xff] }
  0xa8   :  { %v260_v23 = vsub.f32 %v1027_v42, %v216_v22  ;;  %v212_v24 = vpop.permute.xlu0 %211  ;;  %v325_v27 = vrot.slane %v291_v20, 6  ;;  %v637_v22 = vsub.f32 1.0, %v1106_v8 }
  0xa9   :  { %v322_v25 = vrot.slane %v289_v21, 6  ;;  %v258_v26 = vsub.f32 %v1031_v46, %v212_v24 }
  0xaa   :  { %v292_v28 = vmul.f32 %v260_v23, %v260_v23 }
  0xab   :  { %v290_v29 = vmul.f32 %v258_v26, %v258_v26  ;;  %346 = vrot.lane.b32.xlu0 %v322_v25, %s998_s1  ;;  %v220_v30 = vpop.permute.xlu1 %219  ;;  %v1118_v26 = vld [vmem:[#allocation5 + $0x18] sm:$0xff] }
  0xac   :  { %v218_v31 = vpop.permute.xlu0 %217  ;;  %v262_v32 = vsub.f32 %v1035_v50, %v220_v30  ;;  %v326_v37 = vrot.slane %v292_v28, 6 }
  0xad   :  { %v323_v33 = vrot.slane %v290_v29, 6  ;;  %v261_v34 = vsub.f32 %v1039_v53, %v218_v31  ;;  %v639_v31 = vsub.f32 1.0, %v1112_v19 }
  0xae   :  { %v294_v35 = vmul.f32 %v262_v32, %v262_v32  ;;  %v327_v52 = vsel %vm321_vm0, %v325_v27, %v326_v37 }
  0xaf   :  { %v293_v38 = vmul.f32 %v261_v34, %v261_v34  ;;  %350 = vrot.lane.b32.xlu0 %v325_v27, %s998_s1  ;;  %v324_v40 = vsel %vm321_vm0, %v322_v25, %v323_v33  ;;  %v224_v41 = vpop.permute.xlu1 %223  ;;  %v638_v27 = vsub.f32 1.0, %v1110_v17  ;;  %v1124_v33 = vld [vmem:[#allocation5 + $0x20] sm:$0xff]  ;;  %v640_v34 = vsub.f32 1.0, %v1118_v26 }
  0xb0   :  { %348 = vrot.lane.b32.xlu1 %v324_v40, %s998_s1  ;;  %v222_v43 = vpop.permute.xlu0 %221  ;;  %v264_v44 = vsub.f32 %v1043_v56, %v224_v41  ;;  %v329_v47 = vrot.slane %v294_v35, 6 }
  0xb1   :  { %v328_v45 = vrot.slane %v293_v38, 6  ;;  %v263_v48 = vsub.f32 %v1047_v59, %v222_v43  ;;  %v653_v38 = vmul.f32 %v637_v22, %v1023_v39 }
  0xb2   :  { %v296_v49 = vmul.f32 %v264_v44, %v264_v44  ;;  %v1132_v44 = vld [vmem:[#allocation5 + $0x28] sm:$0xff] }
  0xb3   :  { %v295_v51 = vmul.f32 %v263_v48, %v263_v48  ;;  %354 = vrot.lane.b32.xlu0 %v328_v45, %s998_s1  ;;  %v228_v54 = vpop.permute.xlu1 %227  ;;  %v330_v63 = vsel %vm321_vm0, %v328_v45, %v329_v47  ;;  %v641_v45 = vsub.f32 1.0, %v1124_v33  ;;  %v654_v47 = vmul.f32 %v638_v27, %v1031_v46 }
  0xb4   :  { %352 = vrot.lane.b32.xlu1 %v327_v52, %s998_s1  ;;  %v226_v55 = vpop.permute.xlu0 %225  ;;  %v266_v57 = vsub.f32 %v1051_v62, %v228_v54  ;;  %v332_v60 = vrot.slane %v296_v49, 6  ;;  %v655_v52 = vmul.f32 %v639_v31, %v1021_v36 }
  0xb5   :  { %v331_v58 = vrot.slane %v295_v51, 6  ;;  %v265_v61 = vsub.f32 %v1055_v1, %v226_v55  ;;  %v1138_v55 = vld [vmem:[#allocation5 + $0x30] sm:$0xff] }
  0xb6   :  { %v298_v0 = vmul.f32 %v266_v57, %v266_v57  ;;  %v642_v57 = vsub.f32 1.0, %v1132_v44 }
  0xb7   :  { %v297_v2 = vmul.f32 %v265_v61, %v265_v61  ;;  %358 = vrot.lane.b32.xlu0 %v331_v58, %s998_s1  ;;  %v232_v3 = vpop.permute.xlu1 %231  ;;  %v333_v16 = vsel %vm321_vm0, %v331_v58, %v332_v60  ;;  %v656_v58 = vmul.f32 %v640_v34, %v1027_v42  ;;  %v643_v61 = vsub.f32 1.0, %v1138_v55 }
  0xb8   :  { %356 = vrot.lane.b32.xlu1 %v330_v63, %s998_s1  ;;  %v230_v5 = vpop.permute.xlu0 %229  ;;  %v268_v6 = vsub.f32 %v1059_v4, %v232_v3  ;;  %v335_v11 = vrot.slane %v298_v0, 6  ;;  %v1145_v63 = vld [vmem:[#allocation5 + $0x38] sm:$0xff]  ;;  %v657_v0 = vmul.f32 %v641_v45, %v1039_v53  ;;  %v670_v3 = vmul.f32 %v654_v47, %v638_v27 }
  0xb9   :  { %v334_v9 = vrot.slane %v297_v2, 6  ;;  %v267_v13 = vsub.f32 %v1063_v7, %v230_v5  ;;  %v669_v2 = vmul.f32 %v653_v38, %v637_v22  ;;  %v671_v5 = vmul.f32 %v655_v52, %v639_v31  ;;  %v1172_v47 = vld [vmem:[#allocation5 + $0x58] sm:$0xff] }
  0xba   :  { %v300_v18 = vmul.f32 %v268_v6, %v268_v6  ;;  %v659_v22 = vmul.f32 %v643_v61, %v1047_v59  ;;  %v687_v27 = vsel %vm685_vm1, %v670_v3, 0.0  ;;  %v673_v31 = vmul.f32 %v657_v0, %v641_v45  ;;  %v1181_v0 = vld [vmem:[#allocation5 + $0x68] sm:$0xff] }
  0xbb   :  { %v299_v20 = vmul.f32 %v267_v13, %v267_v13  ;;  %362 = vrot.lane.b32.xlu0 %v334_v9, %s998_s1  ;;  %v236_v21 = vpop.permute.xlu1 %235  ;;  %v336_v30 = vsel %vm321_vm0, %v334_v9, %v335_v11  ;;  %v644_v13 = vsub.f32 1.0, %v1145_v63  ;;  %v648_v45 = vsub.f32 1.0, %v1172_v47 }
  0xbc   :  { %v338_v23 = vrot.slane %v300_v18, 6  ;;  %360 = vrot.lane.b32.xlu1 %v333_v16, %s998_s1  ;;  %v234_v24 = vpop.permute.xlu0 %233  ;;  %v270_v25 = vsub.f32 %v1067_v10, %v236_v21  ;;  %v1150_v16 = vld [vmem:[#allocation5 + $0x40] sm:$0xff]  ;;  %v658_v18 = vmul.f32 %v642_v57, %v1035_v50 }
  0xbd   :  { %v337_v28 = vrot.slane %v299_v20, 6  ;;  %v269_v29 = vsub.f32 %v1071_v12, %v234_v24  ;;  %v672_v20 = vmul.f32 %v656_v58, %v640_v34  ;;  %v645_v21 = vsub.f32 1.0, %v1150_v16  ;;  %v1165_v34 = vld [vmem:[#allocation5 + $0x50] sm:$0xff] }
  0xbe   :  { %v302_v32 = vmul.f32 %v270_v25, %v270_v25  ;;  %v660_v24 = vmul.f32 %v644_v13, %v1043_v56  ;;  %v686_v25 = vsel %vm685_vm1, %v669_v2, 0.0  ;;  %v727_v58 = vsub.f32 1.0, %v1031_v46  ;;  %v1183_v2 = vld [vmem:[#allocation5 + $0x70] sm:$0xff] }
  0xbf   :  { %v301_v35 = vmul.f32 %v269_v29, %v269_v29  ;;  %366 = vrot.lane.b32.xlu0 %v337_v28, %s998_s1  ;;  %v240_v37 = vpop.permute.xlu1 %239  ;;  %v339_v43 = vsel %vm321_vm0, %v337_v28, %v338_v23  ;;  %v1157_v23 = vld [vmem:[#allocation5 + $0x48] sm:$0xff]  ;;  %v689_v28 = vsel %vm685_vm1, %v671_v5, 0.0  ;;  %v691_v38 = vsel %vm685_vm1, %v672_v20, 0.0 }
  0xc0   :  { %364 = vrot.lane.b32.xlu1 %v336_v30, %s998_s1  ;;  %v238_v40 = vpop.permute.xlu0 %237  ;;  %v272_v41 = vsub.f32 %v1075_v14, %v240_v37  ;;  %v341_v49 = vrot.slane %v302_v32, 6  ;;  %v646_v30 = vsub.f32 1.0, %v1157_v23  ;;  %v688_v32 = vadd.f32 %v687_v27, %v686_v25 }
  0xc1   :  { %v340_v48 = vrot.slane %v301_v35, 6  ;;  %v271_v51 = vsub.f32 %v1079_v15, %v238_v40  ;;  %v661_v35 = vmul.f32 %v645_v21, %v1055_v1  ;;  %v674_v37 = vmul.f32 %v658_v18, %v642_v57 }
  0xc2   :  { %v304_v54 = vmul.f32 %v272_v41, %v272_v41  ;;  %v647_v40 = vsub.f32 1.0, %v1165_v34  ;;  %v662_v41 = vmul.f32 %v646_v30, %v1051_v62  ;;  %v726_v57 = vsub.f32 1.0, %v1023_v39 }
  0xc3   :  { %v303_v60 = vmul.f32 %v271_v51, %v271_v51  ;;  %370 = vrot.lane.b32.xlu0 %v340_v48, %s998_s1  ;;  %v342_v11 = vsel %vm321_vm0, %v340_v48, %v341_v49  ;;  %v675_v48 = vmul.f32 %v659_v22, %v643_v61  ;;  %v676_v49 = vmul.f32 %v660_v24, %v644_v13  ;;  %v1189_v13 = vld [vmem:[#allocation5 + $0x78] sm:$0xff] }
  0xc4   :  { %368 = vrot.lane.b32.xlu1 %v339_v43, %s998_s1  ;;  %v344_v9 = vrot.slane %v304_v54, 6  ;;  %v690_v43 = vadd.f32 %v689_v28, %v688_v32  ;;  %v663_v51 = vmul.f32 %v647_v40, %v1063_v7  ;;  %v693_v54 = vsel %vm685_vm1, %v673_v31, 0.0 }
  0xc5   :  { %v343_v6 = vrot.slane %v303_v60, 6  ;;  %v1179_v60 = vld [vmem:[#allocation5 + $0x60] sm:$0xff]  ;;  %v677_v3 = vmul.f32 %v661_v35, %v645_v21  ;;  %v695_v61 = vsel %vm685_vm1, %v674_v37, 0.0  ;;  %v651_v18 = vsub.f32 1.0, %v1183_v2 }
  0xc6   :  { %v692_v52 = vadd.f32 %v691_v38, %v690_v43  ;;  %v649_v5 = vsub.f32 1.0, %v1179_v60  ;;  %v697_v22 = vsel %vm685_vm1, %v675_v48, 0.0  ;;  %v699_v24 = vsel %vm685_vm1, %v676_v49, 0.0 }
  0xc7   :  { %374 = vrot.lane.b32.xlu0 %v343_v6, %s998_s1  ;;  %v345_v29 = vsel %vm321_vm0, %v343_v6, %v344_v9  ;;  %v650_v6 = vsub.f32 1.0, %v1181_v0  ;;  %v664_v9 = vmul.f32 %v648_v45, %v1059_v4  ;;  %v679_v27 = vmul.f32 %v663_v51, %v647_v40 }
  0xc8   :  { %372 = vrot.lane.b32.xlu1 %v342_v11, %s998_s1  ;;  %v678_v11 = vmul.f32 %v662_v41, %v646_v30  ;;  %v694_v20 = vadd.f32 %v693_v54, %v692_v52  ;;  %v665_v21 = vmul.f32 %v649_v5, %v1071_v12  ;;  %v728_v28 = vsub.f32 1.0, %v1021_v36 }
  0xc9   :  { %v666_v25 = vmul.f32 %v650_v6, %v1067_v10  ;;  %v701_v30 = vsel %vm685_vm1, %v677_v3, 0.0  ;;  %v729_v32 = vsub.f32 1.0, %v1027_v42  ;;  %v652_v35 = vsub.f32 1.0, %v1189_v13 }
  0xca   :  { %v696_v31 = vadd.f32 %v695_v61, %v694_v20  ;;  %v703_v37 = vsel %vm685_vm1, %v678_v11, 0.0  ;;  %v742_v38 = vmul.f32 %v726_v57, %v1106_v8  ;;  %v743_v41 = vmul.f32 %v727_v58, %v1110_v17 }
  0xcb   :  { %v667_v43 = vmul.f32 %v651_v18, %v1079_v15  ;;  %v730_v40 = vsub.f32 1.0, %v1039_v53  ;;  %v731_v49 = vsub.f32 1.0, %v1035_v50  ;;  %v682_v51 = vmul.f32 %v666_v25, %v650_v6 }
  0xcc   :  { %376 = vrot.lane.b32.xlu1 %v345_v29, %s998_s1  ;;  %v680_v29 = vmul.f32 %v664_v9, %v648_v45  ;;  %v698_v48 = vadd.f32 %v697_v22, %v696_v31  ;;  %v681_v45 = vmul.f32 %v665_v21, %v649_v5  ;;  %v705_v52 = vsel %vm685_vm1, %v679_v27, 0.0 }
  0xcd   :  { %v744_v54 = vmul.f32 %v728_v28, %v1112_v19  ;;  %v732_v57 = vsub.f32 1.0, %v1047_v59  ;;  %v745_v58 = vmul.f32 %v729_v32, %v1118_v26  ;;  %v746_v9 = vmul.f32 %v730_v40, %v1124_v33 }
  0xce   :  { %v700_v3 = vadd.f32 %v699_v24, %v698_v48  ;;  %v707_v61 = vsel %vm685_vm1, %v680_v29, 0.0  ;;  %v747_v11 = vmul.f32 %v731_v49, %v1132_v44  ;;  %v758_v20 = vmul.f32 %v742_v38, %v1106_v8 }
  0xcf   :  { %v759_v5 = vmul.f32 %v743_v41, %v1110_v17  ;;  %v733_v22 = vsub.f32 1.0, %v1043_v56  ;;  %v748_v21 = vmul.f32 %v732_v57, %v1138_v55  ;;  %v760_v24 = vmul.f32 %v744_v54, %v1112_v19 }
  0xd0   :  { %v702_v6 = vadd.f32 %v701_v30, %v700_v3  ;;  %v761_v25 = vmul.f32 %v745_v58, %v1118_v26  ;;  %v762_v27 = vmul.f32 %v746_v9, %v1124_v33  ;;  %v763_v28 = vmul.f32 %v747_v11, %v1132_v44 }
  0xd1   :  { %v774_v29 = vsel %vm685_vm1, %v758_v20, 0.0  ;;  %v734_v8 = vsub.f32 1.0, %v1055_v1  ;;  %v749_v17 = vmul.f32 %v733_v22, %v1145_v63  ;;  %v764_v30 = vmul.f32 %v748_v21, %v1138_v55 }
  0xd2   :  { %v704_v31 = vadd.f32 %v703_v37, %v702_v6  ;;  %v775_v32 = vsel %vm685_vm1, %v759_v5, 0.0  ;;  %v777_v38 = vsel %vm685_vm1, %v760_v24, 0.0  ;;  %v779_v19 = vsel %vm685_vm1, %v761_v25, 0.0 }
  0xd3   :  { %v781_v26 = vsel %vm685_vm1, %v762_v27, 0.0  ;;  %v735_v44 = vsub.f32 1.0, %v1051_v62  ;;  %v750_v41 = vmul.f32 %v734_v8, %v1150_v16  ;;  %v765_v37 = vmul.f32 %v749_v17, %v1145_v63 }
  0xd4   :  { %v706_v33 = vadd.f32 %v705_v52, %v704_v31  ;;  %v709_v48 = vsel %vm685_vm1, %v681_v45, 0.0  ;;  %v776_v40 = vadd.f32 %v775_v32, %v774_v29  ;;  %v783_v55 = vsel %vm685_vm1, %v763_v28, 0.0 }
  0xd5   :  { %v785_v49 = vsel %vm685_vm1, %v764_v30, 0.0  ;;  %v736_v3 = vsub.f32 1.0, %v1063_v7  ;;  %v751_v57 = vmul.f32 %v735_v44, %v1157_v23  ;;  %v766_v52 = vmul.f32 %v750_v41, %v1150_v16 }
  0xd6   :  { %v708_v54 = vadd.f32 %v707_v61, %v706_v33  ;;  %v683_v58 = vmul.f32 %v667_v43, %v651_v18  ;;  %v711_v9 = vsel %vm685_vm1, %v682_v51, 0.0  ;;  %v778_v11 = vadd.f32 %v777_v38, %v776_v40 }
  0xd7   :  { %v787_v63 = vsel %vm685_vm1, %v765_v37, 0.0  ;;  %v737_v45 = vsub.f32 1.0, %v1059_v4  ;;  %v752_v5 = vmul.f32 %v736_v3, %v1165_v34  ;;  %v767_v6 = vmul.f32 %v751_v57, %v1157_v23 }
  0xd8   :  { %v710_v20 = vadd.f32 %v709_v48, %v708_v54  ;;  %v668_v61 = vmul.f32 %v652_v35, %v1075_v14  ;;  %v780_v22 = vadd.f32 %v779_v19, %v778_v11  ;;  %v789_v16 = vsel %vm685_vm1, %v766_v52, 0.0 }
  0xd9   :  { %v738_v18 = vsub.f32 1.0, %v1071_v12  ;;  %v753_v43 = vmul.f32 %v737_v45, %v1172_v47  ;;  %v768_v51 = vmul.f32 %v752_v5, %v1165_v34  ;;  %v791_v25 = vsel %vm685_vm1, %v767_v6, 0.0 }
  0xda   :  { %v712_v21 = vadd.f32 %v711_v9, %v710_v20  ;;  %v782_v24 = vadd.f32 %v781_v26, %v780_v22  ;;  %v713_v27 = vsel %vm685_vm1, %v683_v58, 0.0  ;;  %v739_v23 = vsub.f32 1.0, %v1067_v10 }
  0xdb   :  { %v754_v28 = vmul.f32 %v738_v18, %v1179_v60  ;;  %v769_v29 = vmul.f32 %v753_v43, %v1172_v47  ;;  %v684_v31 = vmul.f32 %v668_v61, %v652_v35  ;;  %v793_v17 = vsel %vm685_vm1, %v768_v51, 0.0 }
  0xdc   :  { %v784_v8 = vadd.f32 %v783_v55, %v782_v24  ;;  %v740_v34 = vsub.f32 1.0, %v1079_v15  ;;  %v755_v30 = vmul.f32 %v739_v23, %v1181_v0  ;;  %v714_v38 = vadd.f32 %v713_v27, %v712_v21 }
  0xdd   :  { %v770_v32 = vmul.f32 %v754_v28, %v1179_v60  ;;  %v795_v26 = vsel %vm685_vm1, %v769_v29, 0.0  ;;  %v741_v33 = vsub.f32 1.0, %v1075_v14  ;;  %v715_v41 = vsel %vm685_vm1, %v684_v31, 0.0 }
  0xde   :  { %v786_v19 = vadd.f32 %v785_v49, %v784_v8  ;;  %v756_v47 = vmul.f32 %v740_v34, %v1183_v2  ;;  %v771_v44 = vmul.f32 %v755_v30, %v1181_v0  ;;  %v716_v49 = vadd.f32 %v715_v41, %v714_v38 }
  0xdf   :  { %v797_v35 = vsel %vm685_vm1, %v770_v32, 0.0  ;;  %v757_v48 = vmul.f32 %v741_v33, %v1189_v13  ;;  %v154_v45 = vrot.slane %v1031_v46, 7  ;;  %v156_v5 = vrot.slane %v1021_v36, 7 }
  0xe0   :  { %v788_v37 = vadd.f32 %v787_v63, %v786_v19  ;;  %v772_v40 = vmul.f32 %v756_v47, %v1183_v2  ;;  %v799_v60 = vsel %vm685_vm1, %v771_v44, 0.0  ;;  %v153_v2 = vrot.slane %v1023_v39, 7 }
  0xe1   :  { %v773_v54 = vmul.f32 %v757_v48, %v1189_v13  ;;  %v159_v22 = vrot.slane %v1039_v53, 7  ;;  %v195_v43 = vsub.f32 %v1021_v36, %v156_v5  ;;  %v160_v21 = vrot.slane %v1035_v50, 7 }
  0xe2   :  { %v790_v55 = vadd.f32 %v789_v16, %v788_v37  ;;  %v801_v3 = vsel %vm685_vm1, %v772_v40, 0.0  ;;  %v193_v13 = vsub.f32 %v1023_v39, %v153_v2  ;;  %v155_v6 = vsel %vm152_vm2, %v153_v2, %v154_v45 }
  0xe3   :  { %v803_v0 = vsel %vm685_vm1, %v773_v54, 0.0  ;;  %v157_v16 = vrot.slane %v1027_v42, 7  ;;  %v194_v18 = vsub.f32 %v1031_v46, %v155_v6  ;;  %v162_v27 = vrot.slane %v1047_v59, 7 }
  0xe4   :  { %v792_v57 = vadd.f32 %v791_v25, %v790_v55  ;;  %v273_v61 = vmul.f32 %v193_v13, %v193_v13  ;;  %v197_v25 = vsub.f32 %v1039_v53, %v159_v22  ;;  %v163_v28 = vrot.slane %v1043_v56, 7 }
  0xe5   :  { %v158_v39 = vsel %vm152_vm2, %v156_v5, %v157_v16  ;;  %v274_v23 = vmul.f32 %v194_v18, %v194_v18  ;;  %v275_v29 = vmul.f32 %v195_v43, %v195_v43  ;;  %v161_v36 = vsel %vm152_vm2, %v159_v22, %v160_v21 }
  0xe6   :  { %v794_v52 = vadd.f32 %v793_v17, %v792_v57  ;;  %v196_v46 = vsub.f32 %v1027_v42, %v158_v39  ;;  %v165_v17 = vrot.slane %v1055_v1, 7  ;;  %v277_v30 = vmul.f32 %v197_v25, %v197_v25 }
  0xe7   :  { %v199_v53 = vsub.f32 %v1047_v59, %v162_v27  ;;  %v164_v38 = vsel %vm152_vm2, %v162_v27, %v163_v28  ;;  %v166_v33 = vrot.slane %v1051_v62, 7  ;;  %v168_v40 = vrot.slane %v1063_v7, 7 }
  0xe8   :  { %v796_v58 = vadd.f32 %v795_v26, %v794_v52  ;;  %v198_v26 = vsub.f32 %v1035_v50, %v161_v36  ;;  %v276_v42 = vmul.f32 %v196_v46, %v196_v46  ;;  %v201_v44 = vsub.f32 %v1055_v1, %v165_v17 }
  0xe9   :  { %v279_v48 = vmul.f32 %v199_v53, %v199_v53  ;;  %v200_v59 = vsub.f32 %v1043_v56, %v164_v38  ;;  %v167_v55 = vsel %vm152_vm2, %v165_v17, %v166_v33  ;;  %v203_v56 = vsub.f32 %v1063_v7, %v168_v40 }
  0xea   :  { %v798_v9 = vadd.f32 %v797_v35, %v796_v58  ;;  %v278_v50 = vmul.f32 %v198_v26, %v198_v26  ;;  %v281_v57 = vmul.f32 %v201_v44, %v201_v44  ;;  %v169_v58 = vrot.slane %v1059_v4, 7 }
  0xeb   :  { %v280_v52 = vmul.f32 %v200_v59, %v200_v59  ;;  %v171_v13 = vrot.slane %v1071_v12, 7  ;;  %v174_v7 = vrot.slane %v1079_v15, 7  ;;  %v283_v22 = vmul.f32 %v203_v56, %v203_v56 }
  0xec   :  { %v800_v11 = vadd.f32 %v799_v60, %v798_v9  ;;  %v202_v9 = vsub.f32 %v1051_v62, %v167_v55  ;;  %vm554_vm0 = vcmask 1045504   ;;  %vm595_vm1 = vcmask 113664  }
  0xed   :  { %v205_v25 = vsub.f32 %v1071_v12, %v171_v13 }
  0xee   :  { %v802_v63 = vadd.f32 %v801_v3, %v800_v11  ;;  %v172_v11 = vrot.slane %v1067_v10, 7  ;;  %v282_v16 = vmul.f32 %v202_v9, %v202_v9 }
  0xf0   :  { %717 = vadd.xlane.f32.xlu1 %v716_v49  ;;  %v1273_v20 = vadd.f32 %v803_v0, %v802_v63  ;;  %v175_v63 = vrot.slane %v1075_v14, 7  ;;  %v173_v18 = vsel %vm152_vm2, %v171_v13, %v172_v11 }
  0xf2   :  { %v176_v43 = vsel %vm152_vm2, %v174_v7, %v175_v63 }
  0xf3   :  { %v208_v46 = vsub.f32 %v1075_v14, %v176_v43 }
 0x11d   :  { %v347_v51 = vpop.permute.xlu0 %346 }
 0x11e   :  { %v394_v24 = vadd.f32 %v347_v51, %v273_v61  ;;  %v170_v61 = vsel %vm152_vm2, %v168_v40, %v169_v58 }
 0x11f   :  { %v204_v27 = vsub.f32 %v1059_v4, %v170_v61 }
 0x120   :  { %v1289_v31 = vadd.f32 1e-08, %v394_v24 }
 0x121   :  { %v351_v8 = vpop.permute.xlu0 %350 }
 0x122   :  { %v349_v34 = vpop.permute.xlu1 %348  ;;  %v396_v19 = vadd.f32 %v351_v8, %v275_v29  ;;  %895 = vrsqrt.f32 %v1289_v31  ;;  %v207_v29 = vsub.f32 %v1079_v15, %v174_v7  ;;  %v206_v8 = vsub.f32 %v1067_v10, %v173_v18 }
 0x123   :  { %v395_v32 = vadd.f32 %v349_v34, %v274_v23  ;;  %vm428_vm3 = vcmp.eq.f32.partialorder %v1289_v31, inf  ;;  %vm430_vm4 = vcmp.eq.f32.partialorder %v1289_v31, 0.0  ;;  %v431_v26 = vand.u32 2147483648, %v1289_v31 }
 0x124   :  { %v1304_v60 = vadd.f32 1e-08, %v396_v19  ;;  %v287_v38 = vmul.f32 %v207_v29, %v207_v29  ;;  %v286_v10 = vmul.f32 %v206_v8, %v206_v8  ;;  %v288_v19 = vmul.f32 %v208_v46, %v208_v46 }
 0x125   :  { %v355_v47 = vpop.permute.xlu0 %354  ;;  %v1300_v35 = vadd.f32 1e-08, %v395_v32  ;;  %v284_v32 = vmul.f32 %v204_v27, %v204_v27 }
 0x126   :  { %v398_v41 = vadd.f32 %v355_v47, %v277_v30  ;;  %v353_v37 = vpop.permute.xlu1 %352  ;;  %v285_v30 = vmul.f32 %v205_v25, %v205_v25  ;;  %vm442_vm5 = vcmp.eq.f32.partialorder %v1304_v60, inf  ;;  %v445_v47 = vand.u32 2147483648, %v1304_v60 }
 0x127   :  { %v397_v54 = vadd.f32 %v353_v37, %v276_v42  ;;  %897 = vrsqrt.f32 %v1300_v35  ;;  %vm435_vm6 = vcmp.eq.f32.partialorder %v1300_v35, inf  ;;  %vm437_vm7 = vcmp.eq.f32.partialorder %v1300_v35, 0.0 }
 0x128   :  { %v1307_v49 = vadd.f32 1e-08, %v398_v41  ;;  %899 = vrsqrt.f32 %v1304_v60  ;;  %vm444_vm10 = vcmp.eq.f32.partialorder %v1304_v60, 0.0 }
 0x129   :  { %v359_v3 = vpop.permute.xlu0 %358  ;;  %v1316_v2 = vadd.f32 1e-08, %v397_v54 }
 0x12a   :  { %v400_v1 = vadd.f32 %v359_v3, %v279_v48  ;;  %v357_v0 = vpop.permute.xlu1 %356  ;;  %901 = vrsqrt.f32 %v1307_v49  ;;  %v438_v48 = vand.u32 2147483648, %v1300_v35  ;;  %vm456_vm8 = vcmp.eq.f32.partialorder %v1307_v49, inf }
 0x12b   :  { %v399_v45 = vadd.f32 %v357_v0, %v278_v50  ;;  %903 = vrsqrt.f32 %v1316_v2  ;;  %v459_v50 = vand.u32 2147483648, %v1307_v49  ;;  %vm449_vm9 = vcmp.eq.f32.partialorder %v1316_v2, inf }
 0x12c   :  { %v1320_v5 = vadd.f32 1e-08, %v400_v1  ;;  %vm451_vm11 = vcmp.eq.f32.partialorder %v1316_v2, 0.0  ;;  %vm458_vm12 = vcmp.eq.f32.partialorder %v1307_v49, 0.0 }
 0x12d   :  { %v363_v6 = vpop.permute.xlu0 %362  ;;  %v1327_v51 = vadd.f32 1e-08, %v399_v45 }
 0x12e   :  { %v361_v62 = vpop.permute.xlu1 %360  ;;  %v402_v21 = vadd.f32 %v363_v6, %v281_v57  ;;  %905 = vrsqrt.f32 %v1320_v5  ;;  %v452_v57 = vand.u32 2147483648, %v1316_v2  ;;  %v473_v1 = vand.u32 2147483648, %v1320_v5 }
 0x12f   :  { %v401_v24 = vadd.f32 %v361_v62, %v280_v52  ;;  %v896_v23 = vpop.eup %895  ;;  %907 = vrsqrt.f32 %v1327_v51  ;;  %vm470_vm13 = vcmp.eq.f32.partialorder %v1320_v5, inf  ;;  %vm463_vm14 = vcmp.eq.f32.partialorder %v1327_v51, inf }
 0x130   :  { %v1336_v36 = vadd.f32 1e-08, %v402_v21  ;;  %v427_v53 = vmul.f32 %v896_v23, %v1289_v31  ;;  %vm465_vm15 = vcmp.eq.f32.partialorder %v1327_v51, 0.0  ;;  %vm472_vm2 = vcmp.eq.f32.partialorder %v1320_v5, 0.0 }
 0x131   :  { %v367_v39 = vpop.permute.xlu0 %366  ;;  %v1338_v17 = vadd.f32 1e-08, %v401_v24 }
 0x132   :  { %v365_v28 = vpop.permute.xlu1 %364  ;;  %v404_v12 = vadd.f32 %v367_v39, %v283_v22  ;;  %909 = vrsqrt.f32 %v1336_v36  ;;  %v429_v37 = vsel %vm428_vm3, %v1289_v31, %v427_v53  ;;  %v466_v22 = vand.u32 2147483648, %v1327_v51 }
 0x133   :  { %v403_v34 = vadd.f32 %v365_v28, %v282_v16  ;;  %911 = vrsqrt.f32 %v1338_v17  ;;  %v1368_v0 = vsel %vm430_vm4, %v431_v26, %v429_v37  ;;  %vm597_vm3 = vcmask 111616  }
 0x134   :  { %v898_v14 = vpop.eup %897  ;;  %v1346_v33 = vadd.f32 1e-08, %v404_v12  ;;  %v555_v18 = vrot.slane %v1368_v0, 2  ;;  %vm484_vm4 = vcmp.eq.f32.partialorder %v1336_v36, inf  ;;  %v487_v46 = vand.u32 2147483648, %v1336_v36 }
 0x135   :  { %v371_v4 = vpop.permute.xlu0 %370  ;;  %v1351_v42 = vadd.f32 1e-08, %v403_v34  ;;  %v900_v41 = vpop.eup %899  ;;  %v434_v40 = vmul.f32 %v898_v14, %v1300_v35 }
 0x136   :  { %v369_v15 = vpop.permute.xlu1 %368  ;;  %v406_v44 = vadd.f32 %v371_v4, %v285_v30  ;;  %913 = vrsqrt.f32 %v1346_v33  ;;  %v441_v9 = vmul.f32 %v900_v41, %v1304_v60 }
 0x137   :  { %v902_v59 = vpop.eup %901  ;;  %915 = vrsqrt.f32 %v1351_v42  ;;  %v405_v56 = vadd.f32 %v369_v15, %v284_v32  ;;  %v436_v31 = vsel %vm435_vm6, %v1300_v35, %v434_v40  ;;  %vm479_vm6 = vcmp.eq.f32.partialorder %v1338_v17, 0.0 }
 0x138   :  { %v904_v3 = vpop.eup %903  ;;  %v1372_v58 = vadd.f32 1e-08, %v406_v44  ;;  %v455_v11 = vmul.f32 %v902_v59, %v1307_v49  ;;  %v443_v24 = vsel %vm442_vm5, %v1304_v60, %v441_v9  ;;  %v439_v25 = vsel %vm437_vm7, %v438_v48, %v436_v31 }
 0x139   :  { %v375_v55 = vpop.permute.xlu0 %374  ;;  %v448_v52 = vmul.f32 %v904_v3, %v1316_v2  ;;  %v1382_v6 = vadd.f32 1e-08, %v405_v56  ;;  %vm477_vm5 = vcmp.eq.f32.partialorder %v1338_v17, inf  ;;  %v556_v34 = vrot.slane %v439_v25, 2 }
 0x13a   :  { %v373_v54 = vpop.permute.xlu1 %372  ;;  %v408_v63 = vadd.f32 %v375_v55, %v287_v38  ;;  %917 = vrsqrt.f32 %v1372_v58  ;;  %v457_v39 = vsel %vm456_vm8, %v1307_v49, %v455_v11  ;;  %vm486_vm7 = vcmp.eq.f32.partialorder %v1336_v36, 0.0 }
 0x13b   :  { %v407_v45 = vadd.f32 %v373_v54, %v286_v10  ;;  %v906_v13 = vpop.eup %905  ;;  %v450_v61 = vsel %vm449_vm9, %v1316_v2, %v448_v52  ;;  %919 = vrsqrt.f32 %v1382_v6  ;;  %v446_v2 = vsel %vm444_vm10, %v445_v47, %v443_v24 }
 0x13c   :  { %v908_v62 = vpop.eup %907  ;;  %v1395_v21 = vadd.f32 1e-08, %v408_v63  ;;  %v1408_v28 = vsel %vm451_vm11, %v452_v57, %v450_v61  ;;  %v469_v29 = vmul.f32 %v906_v13, %v1320_v5  ;;  %v460_v53 = vsel %vm458_vm12, %v459_v50, %v457_v39 }
 0x13d   :  { %v1389_v16 = vadd.f32 1e-08, %v407_v45  ;;  %v462_v43 = vmul.f32 %v908_v62, %v1327_v51  ;;  %v559_v4 = vrot.slane %v1408_v28, 2  ;;  %v480_v49 = vand.u32 2147483648, %v1338_v17 }
 0x13e   :  { %v377_v7 = vpop.permute.xlu1 %376  ;;  %v471_v60 = vsel %vm470_vm13, %v1320_v5, %v469_v29  ;;  %vm498_vm8 = vcmp.eq.f32.partialorder %v1346_v33, inf  ;;  %vm491_vm9 = vcmp.eq.f32.partialorder %v1351_v42, inf  ;;  %v561_v26 = vrot.slane %v460_v53, 2 }
 0x13f   :  { %v409_v27 = vadd.f32 %v377_v7, %v288_v19  ;;  %v910_v23 = vpop.eup %909  ;;  %v464_v8 = vsel %vm463_vm14, %v1327_v51, %v462_v43  ;;  %921 = vrsqrt.f32 %v1389_v16  ;;  %v558_v19 = vrot.slane %v446_v2, 2 }
 0x140   :  { %v912_v35 = vpop.eup %911  ;;  %923 = vrsqrt.f32 %v1395_v21  ;;  %v1431_v32 = vsel %vm465_vm15, %v466_v22, %v464_v8  ;;  %v483_v15 = vmul.f32 %v910_v23, %v1336_v36  ;;  %v501_v51 = vand.u32 2147483648, %v1346_v33 }
 0x141   :  { %v1418_v12 = vadd.f32 1e-08, %v409_v27  ;;  %v476_v30 = vmul.f32 %v912_v35, %v1338_v17  ;;  %v562_v47 = vrot.slane %v1431_v32, 2  ;;  %v494_v44 = vand.u32 2147483648, %v1351_v42 }
 0x142   :  { %v474_v37 = vsel %vm472_vm2, %v473_v1, %v471_v60  ;;  %vm500_vm10 = vcmp.eq.f32.partialorder %v1346_v33, 0.0  ;;  %v557_v59 = vsel %vm554_vm0, %v555_v18, %v556_v34  ;;  %v560_v40 = vsel %vm554_vm0, %v558_v19, %v559_v4 }
 0x143   :  { %925 = vrsqrt.f32 %v1418_v12  ;;  %v478_v38 = vsel %vm477_vm5, %v1338_v17, %v476_v30  ;;  %v914_v10 = vpop.eup %913  ;;  %v485_v50 = vsel %vm484_vm4, %v1336_v36, %v483_v15  ;;  %vm493_vm11 = vcmp.eq.f32.partialorder %v1351_v42, 0.0 }
 0x144   :  { %v916_v14 = vpop.eup %915  ;;  %v1448_v41 = vsel %vm479_vm6, %v480_v49, %v478_v38  ;;  %v497_v17 = vmul.f32 %v914_v10, %v1346_v33  ;;  %v596_v55 = vsel %vm595_vm1, %v557_v59, 0.0  ;;  %v598_v3 = vsel %vm597_vm3, %v556_v34, 0.0 }
 0x145   :  { %v490_v48 = vmul.f32 %v916_v14, %v1351_v42  ;;  %v565_v54 = vrot.slane %v1448_v41, 2  ;;  %v600_v57 = vsel %vm595_vm1, %v560_v40, 0.0  ;;  %v564_v0 = vrot.slane %v474_v37, 2 }
 0x146   :  { %vm505_vm12 = vcmp.eq.f32.partialorder %v1382_v6, inf  ;;  %v563_v52 = vsel %vm554_vm0, %v561_v26, %v562_v47  ;;  %v599_v56 = vadd.f32 %v598_v3, %v596_v55  ;;  %vm507_vm13 = vcmp.eq.f32.partialorder %v1382_v6, 0.0 }
 0x147   :  { %v492_v5 = vsel %vm491_vm9, %v1351_v42, %v490_v48  ;;  %v918_v1 = vpop.eup %917  ;;  %v508_v63 = vand.u32 2147483648, %v1382_v6  ;;  %vm512_vm14 = vcmp.eq.f32.partialorder %v1372_v58, inf  ;;  %v488_v42 = vsel %vm486_vm7, %v487_v46, %v485_v50 }
 0x148   :  { %v920_v9 = vpop.eup %919  ;;  %v495_v11 = vsel %vm493_vm11, %v494_v44, %v492_v5  ;;  %v499_v45 = vsel %vm498_vm8, %v1346_v33, %v497_v17  ;;  %vm514_vm15 = vcmp.eq.f32.partialorder %v1372_v58, 0.0  ;;  %v601_v31 = vadd.f32 %v600_v57, %v599_v56 }
 0x149   :  { %v504_v13 = vmul.f32 %v920_v9, %v1382_v6  ;;  %v511_v62 = vmul.f32 %v918_v1, %v1372_v58  ;;  %v566_v61 = vsel %vm554_vm0, %v564_v0, %v565_v54  ;;  %v602_v22 = vsel %vm597_vm3, %v559_v4, 0.0 }
 0x14a   :  { %v604_v18 = vsel %vm595_vm1, %v563_v52, 0.0  ;;  %v568_v24 = vrot.slane %v495_v11, 2  ;;  %v603_v25 = vadd.f32 %v602_v22, %v601_v31  ;;  %vm519_vm2 = vcmp.eq.f32.partialorder %v1389_v16, inf }
 0x14b   :  { %v506_v36 = vsel %vm505_vm12, %v1382_v6, %v504_v13  ;;  %vm521_vm4 = vcmp.eq.f32.partialorder %v1389_v16, 0.0  ;;  %v522_v23 = vand.u32 2147483648, %v1389_v16  ;;  %v567_v29 = vrot.slane %v488_v42, 2 }
 0x14c   :  { %v922_v7 = vpop.eup %921  ;;  %v509_v27 = vsel %vm507_vm13, %v508_v63, %v506_v36  ;;  %v502_v8 = vsel %vm500_vm10, %v501_v51, %v499_v45  ;;  %v605_v46 = vadd.f32 %v604_v18, %v603_v25  ;;  %v513_v2 = vsel %vm512_vm14, %v1372_v58, %v511_v62 }
 0x14d   :  { %v518_v43 = vmul.f32 %v922_v7, %v1389_v16  ;;  %v924_v39 = vpop.eup %923  ;;  %v606_v34 = vsel %vm597_vm3, %v562_v47, 0.0  ;;  %v608_v30 = vsel %vm595_vm1, %v566_v61, 0.0  ;;  %v569_v4 = vsel %vm554_vm0, %v567_v29, %v568_v24 }
 0x14e   :  { %v525_v53 = vmul.f32 %v924_v39, %v1395_v21  ;;  %v571_v32 = vrot.slane %v509_v27, 2  ;;  %v607_v33 = vadd.f32 %v606_v34, %v605_v46  ;;  %v515_v60 = vand.u32 2147483648, %v1372_v58 }
 0x14f   :  { %v520_v35 = vsel %vm519_vm2, %v1389_v16, %v518_v43  ;;  %vm526_vm5 = vcmp.eq.f32.partialorder %v1395_v21, inf  ;;  %vm533_vm6 = vcmp.eq.f32.partialorder %v1418_v12, inf  ;;  %vm535_vm7 = vcmp.eq.f32.partialorder %v1418_v12, 0.0 }
 0x150   :  { %v926_v28 = vpop.eup %925  ;;  %v523_v15 = vsel %vm521_vm4, %v522_v23, %v520_v35  ;;  %v570_v49 = vrot.slane %v502_v8, 2  ;;  %v609_v10 = vadd.f32 %v608_v30, %v607_v33  ;;  %v516_v19 = vsel %vm514_vm15, %v515_v60, %v513_v2 }
 0x151   :  { %v532_v6 = vmul.f32 %v926_v28, %v1418_v12  ;;  %v536_v51 = vand.u32 2147483648, %v1418_v12  ;;  %v610_v14 = vsel %vm597_vm3, %v565_v54, 0.0  ;;  %v612_v16 = vsel %vm595_vm1, %v569_v4, 0.0 }
 0x152   :  { %v527_v26 = vsel %vm526_vm5, %v1395_v21, %v525_v53  ;;  %v572_v47 = vsel %vm554_vm0, %v570_v49, %v571_v32  ;;  %v574_v44 = vrot.slane %v523_v15, 2  ;;  %v611_v41 = vadd.f32 %v610_v14, %v609_v10 }
 0x153   :  { %v534_v38 = vsel %vm533_vm6, %v1418_v12, %v532_v6  ;;  %v529_v37 = vand.u32 2147483648, %v1395_v21  ;;  %vm528_vm8 = vcmp.eq.f32.partialorder %v1395_v21, 0.0  ;;  %v573_v59 = vrot.slane %v516_v19, 2 }
 0x154   :  { %v537_v48 = vsel %vm535_vm7, %v536_v51, %v534_v38  ;;  %v613_v58 = vadd.f32 %v612_v16, %v611_v41  ;;  %v614_v12 = vsel %vm597_vm3, %v568_v24, 0.0  ;;  %v616_v50 = vsel %vm595_vm1, %v572_v47, 0.0 }
 0x155   :  { %v530_v40 = vsel %vm528_vm8, %v529_v37, %v527_v26  ;;  %v575_v17 = vsel %vm554_vm0, %v573_v59, %v574_v44  ;;  %v577_v55 = vrot.slane %v537_v48, 2  ;;  %v618_v57 = vsel %vm597_vm3, %v571_v32, 0.0 }
 0x156   :  { %v615_v5 = vadd.f32 %v614_v12, %v613_v58  ;;  %v576_v54 = vrot.slane %v530_v40, 2  ;;  %v620_v1 = vsel %vm595_vm1, %v575_v17, 0.0  ;;  %v622_v56 = vsel %vm597_vm3, %v574_v44, 0.0 }
 0x157   :  { %v626_v42 = vsel %vm597_vm3, %v577_v55, 0.0  ;;  %v814_v6 = vlaneseq }
 0x158   :  { %v617_v3 = vadd.f32 %v616_v50, %v615_v5  ;;  %v578_v0 = vsel %vm554_vm0, %v576_v54, %v577_v55 }
 0x159   :  { %v624_v9 = vsel %vm595_vm1, %v578_v0, 0.0  ;;  %v815_v34 = vand.u32 127, %v814_v6  ;;  %v817_v30 = vshrl.u32 %v814_v6, 7 }
 0x15a   :  { %v619_v21 = vadd.f32 %v618_v57, %v617_v3 }
 0x15b   :  { %vm818_vm0 = vcmp.eq.s32.totalorder %v817_v30, 0  ;;  %vm819_vm1 = vcmp.eq.s32.totalorder %v815_v34, 0  ;;  %vm823_vm3 = vcmp.eq.s32.totalorder %v815_v34, 1  ;;  %vm828_vm11 = vcmp.eq.s32.totalorder %v815_v34, 2 }
 0x15c   :  { %v621_v52 = vadd.f32 %v620_v1, %v619_v21  ;;  %vm820_vm9 = vmand %vm818_vm0, %vm819_vm1 }
 0x15d   :  { %vm824_vm10 = vmand %vm818_vm0, %vm823_vm3 }
 0x15e   :  { %v623_v11 = vadd.f32 %v622_v56, %v621_v52  ;;  %vm829_vm12 = vmand %vm818_vm0, %vm828_vm11 }
 0x160   :  { %v625_v63 = vadd.f32 %v624_v9, %v623_v11 }
 0x162   :  { %v627_v45 = vadd.f32 %v626_v42, %v625_v63 }
 0x164   :  { %628 = vadd.xlane.f32.xlu0 %v627_v45 }
 0x168   :  { %805 = vadd.xlane.f32.xlu0 %v1273_v20 }
 0x179   :  { %v718_v13 = vpop.xlane.xlu1 %717 }
 0x17a   :  { %v719_v31 = vrot.slane %v718_v13, 4 }
 0x17c   :  { %v720_v7 = vadd.f32 %v719_v31, %v718_v13 }
 0x17e   :  { %v721_v62 = vrot.slane %v720_v7, 2 }
 0x180   :  { %v722_v36 = vadd.f32 %v721_v62, %v720_v7 }
 0x182   :  { %v723_v23 = vrot.slane %v722_v36, 1 }
 0x184   :  { %v724_v46 = vadd.f32 %v723_v23, %v722_v36 }
 0x1ed   :  { %v629_v61 = vpop.xlane.xlu0 %628 }
 0x1ee   :  { %v630_v22 = vrot.slane %v629_v61, 4 }
 0x1f0   :  { %v631_v18 = vadd.f32 %v630_v22, %v629_v61 }
 0x1f1   :  { %v806_v43 = vpop.xlane.xlu0 %805 }
 0x1f2   :  { %v632_v24 = vrot.slane %v631_v18, 2  ;;  %v807_v25 = vrot.slane %v806_v43, 4 }
 0x1f4   :  { %v808_v39 = vadd.f32 %v807_v25, %v806_v43  ;;  %v633_v27 = vadd.f32 %v632_v24, %v631_v18 }
 0x1f6   :  { %v809_v28 = vrot.slane %v808_v39, 2  ;;  %v634_v29 = vrot.slane %v633_v27, 1 }
 0x1f8   :  { %v810_v8 = vadd.f32 %v809_v28, %v808_v39  ;;  %v635_v35 = vadd.f32 %v634_v29, %v633_v27 }
 0x1fa   :  { %850 = vpush %v635_v35  ;;  %v811_v20 = vrot.slane %v810_v8, 1 }
 0x1fb   :  { %852 = vpush %v724_v46 }
 0x1fc   :  { %v812_v2 = vadd.f32 %v811_v20, %v810_v8 }
 0x1fe   :  { %854 = vpush %v812_v2 }
 0x22b   :  { %s851_s21 = spop %850 }
 0x22c   :  { %v821_v53 = vstv %s851_s21  ;;  %s853_s22 = spop %852 }
 0x22d   :  { %v822_v4 = vsel %vm820_vm9, %v821_v53, 0.0  ;;  %v825_v32 = vstv %s853_s22 }
 0x22e   :  { %v826_v33 = vsel %vm824_vm10, %v825_v32, 0.0 }
 0x22f   :  { %s855_s23 = spop %854  ;;  %v827_v60 = vadd.f32 %v826_v33, %v822_v4 }
 0x230   :  { %v830_v15 = vstv %s855_s23 }
 0x231   :  { %v831_v38 = vsel %vm829_vm12, %v830_v15, 0.0 }
 0x232   :  { %v832_v49 = vadd.f32 %v831_v38, %v827_v60 }
 0x234   :  { %833 = vst [vmem:[#allocation7] sm:$0xff] %v832_v49 }
 0x235   :  { %978 = shalt.err (!%p975_p0)
}
 0x236   :  { %843 = dma.vmem_to_hbm [thread:$0]  %s841_s25, 128, %s1535_s2, [#allocation4]  }
 0x237   :  { %991 = dma.done.wait [#allocation4], 128  }
 0x238   :  { %992 = vsyncadd [#allocation4], 4294967168 }
 0x239   :  { %847 = vsyncpa [#allocation3], 1 }
 0x23a   :  { %848 = vsyncpa [#allocation6], 1 }
 0x23b   :  { %849 = vsyncpa [#allocation4], 1 }

</bundles_post_ra>
